<compile_context>
chip_gen: v7x
topology: tpu7x:2x2x1
jax: 0.10.0
libtpu: 0.0.40
codegen_flags: <defaults>
</compile_context>

<pallas_src>
import functools

import jax
import jax.numpy as jnp
from jax.experimental import pallas as pl
from jax.experimental.pallas import tpu as pltpu


def _round_up(v: int, m: int) -> int:
    return ((v + m - 1) // m) * m


def _cdiv(a: int, b: int) -> int:
    return (a + b - 1) // b


def _choose_tiles(B: int, N: int, L: int, itemsize: int, max_tile_bytes: int):
    """Pick (batch_tile, instance_tile).

    batch tile <= 8 (sublane friendly, keeps resident accumulators small).
    instance tile: largest 128-multiple such that ONE x tile fits `max_tile_bytes`
    (the pipeline double-buffers it), balanced across tiles so padding waste <= 127.
    """
    tb = B if B <= 8 else 8
    if N <= 512:
        return tb, _round_up(N, 8)                 # single tile, minimal padding
    n128 = _round_up(N, 128)
    tn_max = max_tile_bytes // max(1, tb * L * itemsize)
    tn_max = max(128, (tn_max // 128) * 128)
    if tn_max >= n128:
        return tb, n128                            # whole (padded) bag in one tile
    nt = _cdiv(n128, tn_max)
    return tb, _round_up(_cdiv(n128, nt), 128)     # balanced across nt tiles


def _abmil_kernel(x_ref, w1_ref, b1_ref, w2_ref, wc_ref, bc_ref,
                  y_ref, attn_ref, *scratch, n_valid: int, n_tiles: int):
    ni = pl.program_id(1)
    tb, tn, L = x_ref.shape
    D = w1_ref.shape[1]

    x = x_ref[...].astype(jnp.float32)                           # (tb, tn, L)

    # ---- attention MLP stage 1: Linear(L->D) on the MXU with batch folded into M ----
    h = jnp.dot(x.reshape(tb * tn, L), w1_ref[...],
                preferred_element_type=jnp.float32)
    h = jnp.tanh(h + b1_ref[...])                                # (tb*tn, D)
    # TODO(synk): nn.Dropout(0.2) is identity at inference (eval mode); no op emitted.

    # ---- stage 2: Linear(D->1) as VPU broadcast-mul + lane reduce (width-1 matmuls
    # are MXU-hostile).  Its bias is dropped: per-bag constants cancel under softmax.
    a = jnp.sum(h.reshape(tb, tn, D) * w2_ref[...].reshape(1, 1, D),
                axis=-1)                                         # (tb, tn) logits

    # ---- mask instances that only exist because N was padded up to n_tiles * tn ----
    if n_tiles * tn != n_valid:
        col = jax.lax.broadcasted_iota(jnp.int32, (tb, tn), 1) + ni * tn
        a = jnp.where(col < n_valid, a, -1e30)

    if n_tiles == 1:
        # -------- single-pass fast path: plain stable softmax, no scratch --------
        m = jnp.max(a, axis=-1, keepdims=True)                   # (tb, 1)
        p = jnp.exp(a - m)                                       # (tb, tn)
        l = jnp.sum(p, axis=-1, keepdims=True)                   # (tb, 1)
        attn = p / l
        attn_ref[...] = attn.reshape(tb, 1, tn).astype(attn_ref.dtype)
        pooled = jnp.sum(attn[:, :, None] * x, axis=1)           # (tb, L)
        y = jnp.dot(pooled, wc_ref[...], preferred_element_type=jnp.float32)
        y_ref[...] = (y + bc_ref[...]).astype(y_ref.dtype)
        return

    # -------- multi-tile path: online softmax + fused pooling over streamed x --------
    m_scr, l_scr, acc_scr = scratch

    @pl.when(ni == 0)
    def _init():
        m_scr[...] = jnp.full(m_scr.shape, -1e30, dtype=m_scr.dtype)
        l_scr[...] = jnp.zeros_like(l_scr)
        acc_scr[...] = jnp.zeros_like(acc_scr)

    # Stash raw logits in the resident attention output block (normalized on last tile).
    attn_ref[:, pl.ds(ni, 1), :] = a.reshape(tb, 1, tn).astype(attn_ref.dtype)

    m_prev = m_scr[...]                                          # (tb, 1)
    m_new = jnp.maximum(m_prev, jnp.max(a, axis=-1, keepdims=True))
    alpha = jnp.exp(m_prev - m_new)                              # (tb, 1)
    p = jnp.exp(a - m_new)                                       # (tb, tn)
    l_scr[...] = alpha * l_scr[...] + jnp.sum(p, axis=-1, keepdims=True)
    acc_scr[...] = alpha * acc_scr[...] + jnp.sum(p[:, :, None] * x, axis=1)
    m_scr[...] = m_new

    @pl.when(ni == n_tiles - 1)
    def _finalize():
        m_f = m_scr[...].reshape(tb, 1, 1)
        l_f = l_scr[...]                                         # (tb, 1)
        logits = attn_ref[...]                                   # (tb, n_tiles, tn)
        attn_ref[...] = (jnp.exp(logits - m_f) / l_f.reshape(tb, 1, 1)
                         ).astype(attn_ref.dtype)
        pooled = acc_scr[...] / l_f                              # (tb, L)
        y = jnp.dot(pooled, wc_ref[...], preferred_element_type=jnp.float32)
        y_ref[...] = (y + bc_ref[...]).astype(y_ref.dtype)


def abmil_forward(x, params, *, max_tile_bytes=4 * 1024 * 1024, interpret=False):
    """x: (B, N, L). params: dict of ABMIL weights. Returns (y (B,C), attn (B,N,1))."""
    B, N, L = x.shape
    D = params['w1'].shape[1]
    C = params['wc'].shape[1]

    itemsize = jnp.dtype(x.dtype).itemsize
    TB, TN = _choose_tiles(B, N, L, itemsize, max_tile_bytes)
    B_pad, N_pad = _round_up(B, TB), _round_up(N, TN)
    Bt, Nt = B_pad // TB, N_pad // TN

    xp = x
    if (B_pad, N_pad) != (B, N):
        xp = jnp.pad(x, ((0, B_pad - B), (0, N_pad - N), (0, 0)))

    w2_row = params['w2'].reshape(1, D)       # (D, 1) -> (1, D): VPU-friendly row

    kernel = functools.partial(_abmil_kernel, n_valid=N, n_tiles=Nt)

    scratch_shapes = [] if Nt == 1 else [
        pltpu.VMEM((TB, 1), jnp.float32),     # running max
        pltpu.VMEM((TB, 1), jnp.float32),     # running sum
        pltpu.VMEM((TB, L), jnp.float32),     # pooled (unnormalized) accumulator
    ]

    grid_spec = pltpu.PrefetchScalarGridSpec(
        num_scalar_prefetch=0,
        grid=(Bt, Nt),
        in_specs=[
            pl.BlockSpec((TB, TN, L), lambda bi, ni: (bi, ni, 0)),   # x: streamed
            pl.BlockSpec((L, D), lambda bi, ni: (0, 0)),             # w1: resident
            pl.BlockSpec((1, D), lambda bi, ni: (0, 0)),             # b1: resident
            pl.BlockSpec((1, D), lambda bi, ni: (0, 0)),             # w2 row: resident
            pl.BlockSpec((L, C), lambda bi, ni: (0, 0)),             # wc: resident
            pl.BlockSpec((1, C), lambda bi, ni: (0, 0)),             # bc: resident
        ],
        out_specs=(
            pl.BlockSpec((TB, C), lambda bi, ni: (bi, 0)),           # y (written on last N tile)
            pl.BlockSpec((TB, Nt, TN), lambda bi, ni: (bi, 0, 0)),   # attn (resident over N tiles)
        ),
        scratch_shapes=scratch_shapes,
    )

    flops = (2 * B_pad * N_pad * L * D       # L->D projection
             + 2 * B_pad * N_pad * D         # D->1 projection
             + 2 * B_pad * N_pad * L         # attention-weighted pooling
             + 2 * B_pad * L * C)            # classifier
    transcendentals = B_pad * N_pad * (D + 2)          # tanh + exp
    bytes_accessed = (B_pad * N_pad * L * itemsize
                      + 4 * (L * D + 2 * D + L * C + C)
                      + 4 * (B_pad * C + B_pad * N_pad))

    y_pad, attn_pad = pl.pallas_call(
        kernel,
        out_shape=(
            jax.ShapeDtypeStruct((B_pad, C), jnp.float32),
            jax.ShapeDtypeStruct((B_pad, Nt, TN), jnp.float32),
        ),
        grid_spec=grid_spec,
        compiler_params=pltpu.CompilerParams(
            dimension_semantics=("parallel", "arbitrary"),
            vmem_limit_bytes=32 * 1024 * 1024,
        ),
        cost_estimate=pl.CostEstimate(
            flops=flops, transcendentals=transcendentals,
            bytes_accessed=bytes_accessed),
        interpret=interpret,
    )(xp, params['w1'], params['b1'], w2_row, params['wc'], params['bc'])

    y = y_pad[:B]
    attn = attn_pad.reshape(B_pad, N_pad)[:B, :N][:, :, None]
    return y, attn


def _reference(x, p):
    h = jnp.tanh(jnp.einsum('bnl,ld->bnd', x, p['w1']) + p['b1'])
    a = jnp.einsum('bnd,dk->bnk', h, p['w2']) + p['b2']
    attn = jax.nn.softmax(a, axis=1)
    m = jnp.einsum('bnk,bnl->bl', attn, x)
    y = jnp.einsum('bl,lc->bc', m, p['wc']) + p['bc']
    return y, attn


if __name__ == "__main__":
    def _make(B, N, L, C, key):
        D = L // 2
        ks = jax.random.split(key, 7)
        x = jax.random.normal(ks[0], (B, N, L), dtype=jnp.float32)
        params = {
            'w1': jax.random.normal(ks[1], (L, D), dtype=jnp.float32) * 0.1,
            'b1': jax.random.normal(ks[2], (1, D), dtype=jnp.float32) * 0.1,
            'w2': jax.random.normal(ks[3], (D, 1), dtype=jnp.float32) * 0.1,
            'b2': jax.random.normal(ks[4], (1, 1), dtype=jnp.float32) * 0.1,
            'wc': jax.random.normal(ks[5], (L, C), dtype=jnp.float32) * 0.1,
            'bc': jax.random.normal(ks[6], (1, C), dtype=jnp.float32) * 0.1,
        }
        return x, params

    key = jax.random.PRNGKey(0)
    k1, k2 = jax.random.split(key)

    # cfgs = {'feature_dim': 32, 'num_classes': 4}; bag of 8 instances, batch 2.
    x, params = _make(2, 8, 32, 4, k1)
    y, attn = abmil_forward(x, params)
    jax.block_until_ready((y, attn))
    y_exp, attn_exp = _reference(x, params)
    assert y.shape == (2, 4) and attn.shape == (2, 8, 1)
    assert jnp.allclose(y, y_exp, atol=1e-5, rtol=1e-5)
    assert jnp.allclose(attn, attn_exp, atol=1e-5, rtol=1e-5)

    # Larger bag: default budget -> single big tile fast path; tiny budget -> forces
    # the multi-tile online-softmax path with instance padding/masking.
    x2, params2 = _make(2, 2176, 32, 4, k2)
    y2_exp, attn2_exp = _reference(x2, params2)
    for tile_bytes in (4 * 1024 * 1024, 64 * 1024):
        y2, attn2 = abmil_forward(x2, params2, max_tile_bytes=tile_bytes)
        jax.block_until_ready((y2, attn2))
        assert y2.shape == (2, 4) and attn2.shape == (2, 2176, 1)
        assert jnp.allclose(y2, y2_exp, atol=1e-5, rtol=1e-5)
        assert jnp.allclose(attn2, attn2_exp, atol=1e-5, rtol=1e-5)

    print("KERNEL_OK")
</pallas_src>

<mosaic_0001>
module attributes {stable_mosaic.version = 11 : i64} {
  func.func @_abmil_kernel(%arg0: i32, %arg1: i32, %arg2: memref<2x8x32xf32, #tpu.memory_space<vmem>>, %arg3: memref<32x16xf32, #tpu.memory_space<vmem>>, %arg4: memref<1x16xf32, #tpu.memory_space<vmem>>, %arg5: memref<1x16xf32, #tpu.memory_space<vmem>>, %arg6: memref<32x4xf32, #tpu.memory_space<vmem>>, %arg7: memref<1x4xf32, #tpu.memory_space<vmem>>, %arg8: memref<2x4xf32, #tpu.memory_space<vmem>>, %arg9: memref<2x1x8xf32, #tpu.memory_space<vmem>>) attributes {dimension_semantics = [#tpu.dimension_semantics<parallel>, #tpu.dimension_semantics<arbitrary>], iteration_bounds = array<i64: 1, 1>, scalar_prefetch = 0 : i64, scratch_operands = 0 : i64, tpu.core_type = #tpu.core_type<tc>, window_params = [{transform_indices = @transform_0, window_bounds = array<i64: 2, 8, 32>}, {pipeline_mode = #tpu.pipeline_mode<synchronous>, transform_indices = @transform_1, window_bounds = array<i64: 32, 16>}, {pipeline_mode = #tpu.pipeline_mode<synchronous>, transform_indices = @transform_2, window_bounds = array<i64: 1, 16>}, {pipeline_mode = #tpu.pipeline_mode<synchronous>, transform_indices = @transform_3, window_bounds = array<i64: 1, 16>}, {pipeline_mode = #tpu.pipeline_mode<synchronous>, transform_indices = @transform_4, window_bounds = array<i64: 32, 4>}, {pipeline_mode = #tpu.pipeline_mode<synchronous>, transform_indices = @transform_5, window_bounds = array<i64: 1, 4>}, {transform_indices = @transform_6, window_bounds = array<i64: 2, 4>}, {transform_indices = @transform_7, window_bounds = array<i64: 2, 1, 8>}]} {
    %c0 = arith.constant 0 : index
    %c0_0 = arith.constant 0 : index
    %c0_1 = arith.constant 0 : index
    %0 = vector.load %arg2[%c0, %c0_0, %c0_1] : memref<2x8x32xf32, #tpu.memory_space<vmem>>, vector<2x8x32xf32>
    %1 = vector.shape_cast %0 : vector<2x8x32xf32> to vector<16x32xf32>
    %c0_2 = arith.constant 0 : index
    %c0_3 = arith.constant 0 : index
    %2 = vector.load %arg3[%c0_2, %c0_3] : memref<32x16xf32, #tpu.memory_space<vmem>>, vector<32x16xf32>
    %cst = arith.constant dense<0.000000e+00> : vector<16x16xf32>
    %3 = tpu.matmul %1, %2, %cst {dimension_numbers = #tpu.dot_dimension_numbers<[1], [0], [0], [1], [0, 0, 1, 1], [], []>} : vector<16x32xf32>, vector<32x16xf32>, vector<16x16xf32> -> vector<16x16xf32>
    %c0_4 = arith.constant 0 : index
    %c0_5 = arith.constant 0 : index
    %4 = vector.load %arg4[%c0_4, %c0_5] : memref<1x16xf32, #tpu.memory_space<vmem>>, vector<1x16xf32>
    %5 = vector.broadcast %4 : vector<1x16xf32> to vector<16x16xf32>
    %6 = arith.addf %3, %5 : vector<16x16xf32>
    %7 = math.tanh %6 : vector<16x16xf32>
    %8 = vector.shape_cast %7 : vector<16x16xf32> to vector<2x8x16xf32>
    %c0_6 = arith.constant 0 : index
    %c0_7 = arith.constant 0 : index
    %9 = vector.load %arg5[%c0_6, %c0_7] : memref<1x16xf32, #tpu.memory_space<vmem>>, vector<1x16xf32>
    %10 = vector.shape_cast %9 : vector<1x16xf32> to vector<1x1x16xf32>
    %11 = vector.broadcast %10 : vector<1x1x16xf32> to vector<2x8x16xf32>
    %12 = arith.mulf %8, %11 : vector<2x8x16xf32>
    %cst_8 = arith.constant dense<0.000000e+00> : vector<2x8xf32>
    %13 = vector.multi_reduction <add>, %12, %cst_8 [2] : vector<2x8x16xf32> to vector<2x8xf32>
    %cst_9 = arith.constant dense<0xFF800000> : vector<2xf32>
    %14 = vector.multi_reduction <maximumf>, %13, %cst_9 [1] : vector<2x8xf32> to vector<2xf32>
    %15 = vector.shape_cast %14 : vector<2xf32> to vector<2x1xf32>
    %16 = vector.broadcast %15 : vector<2x1xf32> to vector<2x8xf32>
    %17 = arith.subf %13, %16 : vector<2x8xf32>
    %18 = math.exp %17 : vector<2x8xf32>
    %cst_10 = arith.constant dense<0.000000e+00> : vector<2xf32>
    %19 = vector.multi_reduction <add>, %18, %cst_10 [1] : vector<2x8xf32> to vector<2xf32>
    %20 = vector.shape_cast %19 : vector<2xf32> to vector<2x1xf32>
    %21 = vector.broadcast %20 : vector<2x1xf32> to vector<2x8xf32>
    %22 = arith.divf %18, %21 : vector<2x8xf32>
    %23 = vector.shape_cast %22 : vector<2x8xf32> to vector<2x1x8xf32>
    %c0_11 = arith.constant 0 : index
    %c0_12 = arith.constant 0 : index
    %c0_13 = arith.constant 0 : index
    %24 = vector.load %arg9[%c0_11, %c0_12, %c0_13] : memref<2x1x8xf32, #tpu.memory_space<vmem>>, vector<2x1x8xf32>
    tpu.vector_store %arg9[%c0_11, %c0_12, %c0_13], %23 {strides = array<i32>} : memref<2x1x8xf32, #tpu.memory_space<vmem>>, vector<2x1x8xf32>,
    %25 = vector.shape_cast %22 : vector<2x8xf32> to vector<2x8x1xf32>
    %26 = vector.broadcast %25 : vector<2x8x1xf32> to vector<2x8x32xf32>
    %27 = arith.mulf %26, %0 : vector<2x8x32xf32>
    %cst_14 = arith.constant dense<0.000000e+00> : vector<2x32xf32>
    %28 = vector.multi_reduction <add>, %27, %cst_14 [1] : vector<2x8x32xf32> to vector<2x32xf32>
    %c0_15 = arith.constant 0 : index
    %c0_16 = arith.constant 0 : index
    %29 = vector.load %arg6[%c0_15, %c0_16] : memref<32x4xf32, #tpu.memory_space<vmem>>, vector<32x4xf32>
    %cst_17 = arith.constant dense<0.000000e+00> : vector<2x4xf32>
    %30 = tpu.matmul %28, %29, %cst_17 {dimension_numbers = #tpu.dot_dimension_numbers<[1], [0], [0], [1], [0, 0, 1, 1], [], []>} : vector<2x32xf32>, vector<32x4xf32>, vector<2x4xf32> -> vector<2x4xf32>
    %c0_18 = arith.constant 0 : index
    %c0_19 = arith.constant 0 : index
    %31 = vector.load %arg7[%c0_18, %c0_19] : memref<1x4xf32, #tpu.memory_space<vmem>>, vector<1x4xf32>
    %32 = vector.broadcast %31 : vector<1x4xf32> to vector<2x4xf32>
    %33 = arith.addf %30, %32 : vector<2x4xf32>
    %c0_20 = arith.constant 0 : index
    %c0_21 = arith.constant 0 : index
    %34 = vector.load %arg8[%c0_20, %c0_21] : memref<2x4xf32, #tpu.memory_space<vmem>>, vector<2x4xf32>
    tpu.vector_store %arg8[%c0_20, %c0_21], %33 {strides = array<i32>} : memref<2x4xf32, #tpu.memory_space<vmem>>, vector<2x4xf32>,
    return
  }
  func.func @transform_0(%arg0: i32, %arg1: i32) -> (i32, i32, i32) {
    %c0_i32 = arith.constant 0 : i32
    %c0_i32_0 = arith.constant 0 : i32
    return %arg0, %arg1, %c0_i32 : i32, i32, i32
  }
  func.func @transform_1(%arg0: i32, %arg1: i32) -> (i32, i32) {
    %c0_i32 = arith.constant 0 : i32
    %c0_i32_0 = arith.constant 0 : i32
    %c0_i32_1 = arith.constant 0 : i32
    return %c0_i32, %c0_i32_0 : i32, i32
  }
  func.func @transform_2(%arg0: i32, %arg1: i32) -> (i32, i32) {
    %c0_i32 = arith.constant 0 : i32
    %c0_i32_0 = arith.constant 0 : i32
    %c0_i32_1 = arith.constant 0 : i32
    return %c0_i32, %c0_i32_0 : i32, i32
  }
  func.func @transform_3(%arg0: i32, %arg1: i32) -> (i32, i32) {
    %c0_i32 = arith.constant 0 : i32
    %c0_i32_0 = arith.constant 0 : i32
    %c0_i32_1 = arith.constant 0 : i32
    return %c0_i32, %c0_i32_0 : i32, i32
  }
  func.func @transform_4(%arg0: i32, %arg1: i32) -> (i32, i32) {
    %c0_i32 = arith.constant 0 : i32
    %c0_i32_0 = arith.constant 0 : i32
    %c0_i32_1 = arith.constant 0 : i32
    return %c0_i32, %c0_i32_0 : i32, i32
  }
  func.func @transform_5(%arg0: i32, %arg1: i32) -> (i32, i32) {
    %c0_i32 = arith.constant 0 : i32
    %c0_i32_0 = arith.constant 0 : i32
    %c0_i32_1 = arith.constant 0 : i32
    return %c0_i32, %c0_i32_0 : i32, i32
  }
  func.func @transform_6(%arg0: i32, %arg1: i32) -> (i32, i32) {
    %c0_i32 = arith.constant 0 : i32
    %c0_i32_0 = arith.constant 0 : i32
    return %arg0, %c0_i32 : i32, i32
  }
  func.func @transform_7(%arg0: i32, %arg1: i32) -> (i32, i32, i32) {
    %c0_i32 = arith.constant 0 : i32
    %c0_i32_0 = arith.constant 0 : i32
    %c0_i32_1 = arith.constant 0 : i32
    return %arg0, %c0_i32, %c0_i32_0 : i32, i32, i32
  }
}

</mosaic_0001>

<bundles_post_ra>
// kernel: tpu_custom_call.1
= control target key start
LH: loop header
LB: loop body
LE: loop exit
PB: predicated region body
PF: predicated region fallthrough
CT: control target
= control target key end

     0   :  { %13 = vsyncpa [#allocation3], 0  ;;  %vm40_vm0 = vcmask 261120   ;;  %s629_s0 = inlined_call_operand.vmem [shape: f32[2,8,32], index: 0, kind: input, shape index: {}]   ;;  %s630_s1 = inlined_call_operand.vmem [shape: f32[32,16], index: 1, kind: input, shape index: {}]   ;;  %s631_s2 = inlined_call_operand.vmem [shape: f32[1,16], index: 2, kind: input, shape index: {}]   ;;  %s632_s3 = inlined_call_operand.vmem [shape: f32[1,16], index: 3, kind: input, shape index: {}]   ;;  %s633_s4 = inlined_call_operand.vmem [shape: f32[32,4], index: 4, kind: input, shape index: {}]   ;;  %s634_s5 = inlined_call_operand.vmem [shape: f32[1,4], index: 5, kind: input, shape index: {}]   ;;  %s635_s6 = inlined_call_operand.hbm [shape: f32[2,4], index: 6, kind: output, shape index: {0}]   ;;  %s636_s7 = inlined_call_operand.hbm [shape: f32[2,1,8], index: 7, kind: output, shape index: {1}]  }
   0x1   :  { %v29_v0 = vld [vmem:[%s630_s1] sm:$0xff]  ;;  %v30_v1 = vld [vmem:[%s630_s1 + $0x8] sm:$0xff]  ;;  %v31_v2 = vld [vmem:[%s630_s1 + $0x10] sm:$0xff] }
   0x2   :  { %v408_v3 = vpack.c.bf16 %v30_v1, %v29_v0  ;;  %v32_v4 = vld [vmem:[%s630_s1 + $0x18] sm:$0xff]  ;;  %v555_v5 = vld [vmem:[%s629_s0] sm:$0xff] }
   0x3   :  { %v412_v6 = vpack.c.bf16 %v32_v4, %v31_v2  ;;  %394 = vmatprep.mubr.msk.f32.mxu0 %vm40_vm0, %v555_v5 }
   0x4   :  { %14 = vsyncpa [#allocation5], 0  ;;  %409 = vmatprep.subr.bf16.mxu0 %v408_v3  ;;  %v562_v7 = vld [vmem:[%s629_s0 + $0x8] sm:$0xff]  ;;  %v369_v8 = vld [vmem:[%s631_s2] ss:$0 sm:$0xff]  ;;  %vm133_vm1 = vcmask 130048   ;;  %v142_v20 = vlaneseq }
   0x5   :  { %411 = vmatpush3.bf16.msra.mxu0 %v408_v3  ;;  %v372_v13 = vld [vmem:[%s632_s3] ss:$0 sm:$0xff]  ;;  %vm152_vm2 = vcmask 1041409   ;;  %vm155_vm3 = vcmask 58368   ;;  %v492_v30 = vmov 0   ;;  %v252_v56 = vld [vmem:[%s633_s4 + $0x8] sm:$0xff] }
   0x6   :  { %413 = vmatprep.subr.bf16.mxu0 %v412_v6  ;;  %v143_v21 = vand.u32 127, %v142_v20  ;;  %v145_v22 = vshrl.u32 %v142_v20, 7  ;;  %431 = vset.pattern.permute.xlu0 %v492_v30  ;;  %v251_v55 = vld [vmem:[%s633_s4] sm:$0xff]  ;;  %v493_v58 = vmov 0.0|0.0   ;;  %v253_v59 = vld [vmem:[%s633_s4 + $0x10] sm:$0xff]  ;;  %v254_v60 = vld [vmem:[%s633_s4 + $0x18] sm:$0xff] }
   0x7   :  { %430 = vset.pattern.permute.xlu1 %v492_v30  ;;  %v417_v57 = vpack.c.bf16 %v252_v56, %v251_v55  ;;  %416 = vmatprep.subr.bf16.mxu1 %v493_v58  ;;  %v420_v61 = vpack.c.bf16 %v254_v60, %v253_v59  ;;  %vm494_vm4 = vmmov 0   ;;  %v495_v62 = vmov 0.0   ;;  %s496_s4 = smov [#allocation4]  }
   0x8   :  { %v572_v24 = vsub.s32 %v143_v21, %v145_v22  ;;  %v162_v31 = vsub.s32 0, %v145_v22  ;;  %v166_v32 = vsub.s32 1, %v145_v22  ;;  %405 = vmatprep.mubr.msk.f32.mxu1 %vm494_vm4, %v495_v62  ;;  %vm230_vm5 = vcmask 57344   ;;  %s354_s21 = sshll.u32 %s496_s4, 4  ;;  %s355_s21 = int_to_ptr.vmem [resolvable:$true] %s354_s21 }
   0x9   :  { %415 = vmatpush3.bf16.msra.mxu0 %v412_v6  ;;  %418 = vmatpush3.bf16.msra.mxu1 %v417_v57  ;;  %s444_s22 = scalar_lea.vmem %s355_s21, 32  ;;  %p449_p1 = scmp.lt.s32.totalorder %s355_s21, %s355_s21 }
   0xa   :  { %419 = vmatprep.subr.bf16.mxu1 %v493_v58  ;;  %p445_p0 = scmp.ne.s32.totalorder %s355_s21, %s444_s22  ;;  %p450_p2 = scmp.lt.s32.totalorder %s444_s22, %s444_s22 }
   0xc   :  { %395 = vmatmul.mubr.msk.f32.vlgmr.msra.gmra.mrb[0].mxu0 %vm40_vm0, %v562_v7  ;;  %p451_p3 = por %p450_p2, %p449_p1 }
   0xd   :  { %421 = vmatpush3.bf16.msra.mxu1 %v420_v61 }
   0xe   :  { %p452_p4 = pnand %p451_p3, %p445_p0 }
  0xdf   :  { %v396_v9 = vpop.f32.mrb[0].mxu0 }
  0xe0   :  { %v119_v10 = vadd.f32 %v396_v9, %v369_v8  ;;  %v113_v11 = vpop.f32.mrb[1].mxu0 }
  0xe1   :  { %v114_v12 = vadd.f32 %v369_v8, %v113_v11 }
  0xe2   :  { %432 = vtanh.f32 %v119_v10 }
  0xe3   :  { %434 = vtanh.f32 %v114_v12 }
  0xec   :  { %v433_v14 = vpop.eup %432 }
  0xed   :  { %v435_v15 = vpop.eup %434  ;;  %v132_v18 = vmul.f32 %v433_v14, %v372_v13 }
  0xee   :  { %v131_v16 = vmul.f32 %v435_v15, %v372_v13 }
  0xef   :  { %v137_v19 = vsel %vm133_vm1, %v132_v18, 0.0 }
  0xf0   :  { %v134_v17 = vsel %vm133_vm1, %v131_v16, 0.0 }
  0xf1   :  { %135 = vadd.xlane.f32.xlu0 %v134_v17 }
  0xf5   :  { %138 = vadd.xlane.f32.xlu0 %v137_v19 }
 0x17e   :  { %v136_v23 = vpop.xlane.xlu0 %135 }
 0x17f   :  { %v147_v26 = vrot.slane %v136_v23, %v572_v24 }
 0x182   :  { %v139_v25 = vpop.xlane.xlu0 %138 }
 0x183   :  { %v151_v27 = vrot.slane %v139_v25, %v572_v24 }
 0x185   :  { %v153_v28 = vsel %vm152_vm2, %v151_v27, %v147_v26 }
 0x186   :  { %v156_v29 = vsel %vm155_vm3, %v153_v28, -inf }
 0x187   :  { %157 = vmax.xlane.f32.xlu1 %v156_v29 }
 0x214   :  { %v158_v33 = vpop.xlane.xlu1 %157 }
 0x215   :  { %v163_v34 = vrot.slane %v158_v33, %v162_v31  ;;  %v167_v35 = vrot.slane %v158_v33, %v166_v32 }
 0x217   :  { %v170_v36 = vsub.f32 %v136_v23, %v163_v34  ;;  %v171_v37 = vsub.f32 %v139_v25, %v167_v35 }
 0x219   :  { %v172_v38 = vmul.f32 1.442695, %v170_v36  ;;  %v174_v39 = vmul.f32 1.442695, %v171_v37 }
 0x21b   :  { %436 = vpow2.f32 %v172_v38 }
 0x21c   :  { %438 = vpow2.f32 %v174_v39 }
 0x225   :  { %v437_v40 = vpop.eup %436 }
 0x226   :  { %v439_v41 = vpop.eup %438  ;;  %179 = vperm.xlu1 %430, %v437_v40  }
 0x227   :  { %182 = vperm.xlu0 %431, %v439_v41  }
 0x2a5   :  { %v180_v42 = vpop.permute.xlu1 %179 }
 0x2a6   :  { %v183_v43 = vpop.permute.xlu0 %182  ;;  %v187_v44 = vrot.slane %v180_v42, %v572_v24 }
 0x2a7   :  { %v191_v45 = vrot.slane %v183_v43, %v572_v24 }
 0x2a9   :  { %v192_v46 = vsel %vm152_vm2, %v191_v45, %v187_v44 }
 0x2aa   :  { %v194_v47 = vsel %vm155_vm3, %v192_v46, 0.0 }
 0x2ab   :  { %195 = vadd.xlane.f32.xlu1 %v194_v47 }
 0x338   :  { %v196_v48 = vpop.xlane.xlu1 %195 }
 0x339   :  { %v201_v49 = vrot.slane %v196_v48, %v162_v31  ;;  %v205_v50 = vrot.slane %v196_v48, %v166_v32 }
 0x33b   :  { %440 = vrcp.f32 %v201_v49 }
 0x33c   :  { %442 = vrcp.f32 %v205_v50 }
 0x345   :  { %v441_v51 = vpop.eup %440 }
 0x346   :  { %v209_v52 = vmul.f32 %v441_v51, %v437_v40  ;;  %v443_v53 = vpop.eup %442 }
 0x347   :  { %v211_v54 = vmul.f32 %v443_v53, %v439_v41 }
 0x348   :  { %215 = vperm.xlu0 %431, %v209_v52  }
 0x34c   :  { %218 = vperm.xlu0 %431, %v211_v54  }
 0x3c7   :  { %v216_v63 = vpop.permute.xlu0 %215 }
 0x3c8   :  { %v223_v0 = vrot.slane %v216_v63, %v572_v24  ;;  %v235_v1 = vmul.f32 %v216_v63, %v555_v5 }
 0x3ca   :  { %v237_v2 = vsel %vm40_vm0, %v235_v1, 0.0  ;;  %231 = vst.msk [vmem:[#allocation4] sm:$0x1] %vm230_vm5, %v223_v0 }
 0x3cb   :  { %v238_v3 = vrot.slane %v237_v2, 4  ;;  %v219_v4 = vpop.permute.xlu0 %218 }
 0x3cc   :  { %v227_v6 = vrot.slane %v219_v4, %v572_v24  ;;  %v236_v8 = vmul.f32 %v219_v4, %v562_v7 }
 0x3cd   :  { %v239_v9 = vadd.f32 %v238_v3, %v237_v2 }
 0x3ce   :  { %232 = vst.msk [vmem:[#allocation4 + $0x1] sm:$0x1] %vm230_vm5, %v227_v6  ;;  %v244_v10 = vsel %vm40_vm0, %v236_v8, 0.0 }
 0x3cf   :  { %v240_v11 = vrot.slane %v239_v9, 2  ;;  %v245_v12 = vrot.slane %v244_v10, 4 }
 0x3d1   :  { %v241_v13 = vadd.f32 %v240_v11, %v239_v9  ;;  %v246_v14 = vadd.f32 %v245_v12, %v244_v10 }
 0x3d3   :  { %v247_v15 = vrot.slane %v246_v14, 2  ;;  %v242_v16 = vrot.slane %v241_v13, 1 }
 0x3d5   :  { %v248_v5 = vadd.f32 %v247_v15, %v246_v14  ;;  %v243_v19 = vadd.f32 %v242_v16, %v241_v13 }
 0x3d7   :  { %v249_v17 = vrot.slane %v248_v5, 1 }
 0x3d9   :  { %v250_v18 = vadd.f32 %v249_v17, %v248_v5 }
 0x3db   :  { %v264_v20 = vsel %vm152_vm2, %v250_v18, %v243_v19 }
 0x3dc   :  { %406 = vmatmul.mubr.msk.f32.vlgmr.msra.gmra.mrb[0].mxu1 %vm40_vm0, %v264_v20 }
 0x3dd   :  { %455 = shalt.err (!%p452_p4)
}
 0x3de   :  { %s456_s25 = scalar_lea.hbm %s636_s7, 32 }
 0x3df   :  { %p457_p5 = scmp.ne.s32.totalorder %s636_s7, %s456_s25  ;;  %p460_p6 = scmp.lt.u32.totalorder %s456_s25, %s636_s7 }
 0x3e1   :  { %p462_p7 = pnand %p460_p6, %p457_p5 }
 0x3e3   :  { %465 = shalt.err (!%p462_p7)
}
 0x3e4   :  { %s497_s30 = smov 16   ;;  %s498_s8 = smov 1   ;;  %v373_v7 = vld [vmem:[%s634_s5] ss:$0 sm:$0xff]  ;;  %vm337_vm6 = vcmask 25600  }
 0x3e5   :  { %360 = dma.vmem_to_hbm [thread:$0]  %s355_s21, 32, %s636_s7, [#allocation5], %s497_s30, %s497_s30, %s498_s8  }
 0x3e6   :  { %s499_s1 = smov [#allocation2]  }
 0x3e7   :  { %s345_s13 = sshll.u32 %s499_s1, 4  ;;  %s346_s13 = int_to_ptr.vmem [resolvable:$true] %s345_s13 }
 0x3e8   :  { %s466_s14 = scalar_lea.vmem %s346_s13, 32  ;;  %p471_p9 = scmp.lt.s32.totalorder %s346_s13, %s346_s13 }
 0x3e9   :  { %p467_p8 = scmp.ne.s32.totalorder %s346_s13, %s466_s14  ;;  %p472_p10 = scmp.lt.s32.totalorder %s466_s14, %s466_s14 }
 0x3eb   :  { %p473_p11 = por %p472_p10, %p471_p9 }
 0x3ed   :  { %p474_p12 = pnand %p473_p11, %p467_p8 }
 0x4af   :  { %v333_v21 = vpop.f32.mrb[0].mxu1 }
 0x4b0   :  { %v334_v22 = vadd.f32 %v373_v7, %v333_v21  ;;  %v407_v23 = vpop.f32.mrb[1].mxu1 }
 0x4b2   :  { %338 = vst.msk [vmem:[#allocation2] sm:$0x3] %vm337_vm6, %v334_v22 }
 0x4b3   :  { %477 = shalt.err (!%p474_p12)
}
 0x4b4   :  { %s478_s0 = scalar_lea.hbm %s635_s6, 32 }
 0x4b5   :  { %p479_p13 = scmp.ne.s32.totalorder %s635_s6, %s478_s0  ;;  %p482_p0 = scmp.lt.u32.totalorder %s478_s0, %s635_s6 }
 0x4b7   :  { %p484_p1 = pnand %p482_p0, %p479_p13 }
 0x4b9   :  { %487 = shalt.err (!%p484_p1)
}
 0x4ba   :  { %348 = dma.vmem_to_hbm [thread:$0]  %s346_s13, 32, %s635_s6, [#allocation3]  }
 0x4bb   :  { %488 = dma.done.wait [#allocation3], 32  }
 0x4bc   :  { %489 = vsyncadd [#allocation3], 4294967264 }
 0x4bd   :  { %490 = dma.done.wait [#allocation5], 32  }
 0x4be   :  { %491 = vsyncadd [#allocation5], 4294967264 }
 0x4bf   :  { %367 = vsyncpa [#allocation3], 1 }
 0x4c0   :  { %368 = vsyncpa [#allocation5], 1 }

</bundles_post_ra>
